<compile_context>
chip_gen: v7x
topology: tpu7x:2x2x1
jax: 0.10.0
libtpu: 0.0.40
codegen_flags: <defaults>
</compile_context>

<pallas_src>
import functools

import jax
import jax.numpy as jnp
from jax import lax
from jax.experimental import pallas as pl
from jax.experimental.pallas import tpu as pltpu

_WIDTHS = (512, 256, 128)          # candidate lane widths (multiples of 128)
_VMEM_LIMIT = 40 * 1024 * 1024     # comfortable under v7x's 64 MiB VMEM
_STREAM_BUDGET = 28 * 1024 * 1024  # budget for double-buffered stream blocks


def _round_up(x, m):
    return ((x + m - 1) // m) * m


def _cdiv(a, b):
    return -(-a // b)


@functools.lru_cache(maxsize=1)
def _tensorcores_per_chip():
    """2 on v7x-style megacore chips, 1 on v5e/v6e (and on failure)."""
    try:
        kind = jax.devices()[0].device_kind.lower()
    except Exception:
        return 1
    return 2 if "v7" in kind else 1


def _pick_layout(n):
    """View n elements as a lane-dense (rows, width) slab.

    Prefers a width for which the reshape is free (n % (8*width) == 0, so no
    padding and rows is a multiple of 8).  Falls back to a zero-padded
    (rows, 512) slab only for truly ragged sizes.
    """
    for w in _WIDTHS:
        if n % (8 * w) == 0:
            return w, n // w, False
    w = _WIDTHS[0]
    rows = _round_up(_cdiv(n, w), 8)
    return w, rows, True


def _as_slab(x, rows, width, padded):
    flat = jnp.ravel(x)
    if padded:
        flat = jnp.pad(flat, (0, rows * width - flat.shape[0]))
    return flat.reshape(rows, width)


def _choose_block_rows(rows, n_streams, width, itemsize):
    """Largest row-block (multiple of 8) whose double-buffered streams fit."""
    cap = _STREAM_BUDGET // (2 * n_streams * width * max(int(itemsize), 1))
    cap = max(8, min(cap, 8192))
    cap = (cap // 8) * 8
    if rows <= cap:
        return rows
    if rows % cap == 0:
        return cap
    # Prefer a block that divides rows (no ragged last block) if one exists
    # not too far below the cap; otherwise keep the cap and mask in-kernel.
    c = cap
    floor = max(8, cap // 2)
    while c >= floor:
        if rows % c == 0:
            return c
        c -= 8
    return cap


# ---------------------------------------------------------------- kernels ---
def _make_reduce_kernel(n_preds, has_weight, block_rows, width, rows, steps):
    """Fused partial-sum kernel for |pred_k - target| (* weight) and sum(w)."""
    sub = block_rows // 8
    ragged = (rows % block_rows) != 0

    def kernel(*refs):
        idx = 0
        pred_refs = refs[idx:idx + n_preds]; idx += n_preds
        tgt_ref = refs[idx]; idx += 1
        w_ref = None
        if has_weight:
            w_ref = refs[idx]; idx += 1
        out_refs = refs[idx:idx + n_preds]; idx += n_preds
        wout_ref = None
        if has_weight:
            wout_ref = refs[idx]; idx += 1
        acc_refs = refs[idx:idx + n_preds]; idx += n_preds
        wacc_ref = refs[idx] if has_weight else None

        c = pl.program_id(0)
        i = pl.program_id(1)

        @pl.when(i == 0)
        def _():
            for a_ref in acc_refs:
                a_ref[...] = jnp.zeros(a_ref.shape, a_ref.dtype)
            if has_weight:
                wacc_ref[...] = jnp.zeros(wacc_ref.shape, wacc_ref.dtype)

        t = tgt_ref[...].astype(jnp.float32)
        w = w_ref[...].astype(jnp.float32) if has_weight else None

        keep = None
        if ragged:
            # The globally last block may read past the end of the slab; the
            # out-of-range rows are unspecified, so mask them to zero.
            valid = rows - (c * steps + i) * block_rows
            row_id = lax.broadcasted_iota(jnp.int32, (block_rows, width), 0)
            keep = row_id < valid

        for p_ref, a_ref in zip(pred_refs, acc_refs):
            x = jnp.abs(p_ref[...].astype(jnp.float32) - t)
            if has_weight:
                x = x * w
            if ragged:
                x = jnp.where(keep, x, 0.0)
            # Collapse sublane groups onto the (8, width) accumulator: pure
            # vreg-to-vreg VPU adds, no XLU, tiny scratch.
            a_ref[...] += x.reshape(sub, 8, width).sum(axis=0)

        if has_weight:
            wv = jnp.where(keep, w, 0.0) if ragged else w
            wacc_ref[...] += wv.reshape(sub, 8, width).sum(axis=0)

        @pl.when(i == pl.num_programs(1) - 1)
        def _():
            for o_ref, a_ref in zip(out_refs, acc_refs):
                o_ref[...] = a_ref[...]
            if has_weight:
                wout_ref[...] = wacc_ref[...]

    return kernel


def _l1_none_kernel(pred_ref, tgt_ref, out_ref):
    """Elementwise |pred - target| (reduction='none'), native dtype."""
    out_ref[...] = jnp.abs(pred_ref[...] - tgt_ref[...]).astype(out_ref.dtype)


# ------------------------------------------------------------- glue / call ---
def _pallas_l1_reduce_sums(preds, target, weight=None):
    """Fused sums of |pred_k - target| (* weight) and optional sum(weight).

    Streams target (and weight) from HBM exactly once regardless of how many
    preds are given.  Returns (list_of_f32_sums, f32_weight_sum_or_None).
    """
    has_weight = weight is not None
    n = preds[0].size
    width, rows, padded = _pick_layout(n)

    tensors = list(preds) + [target] + ([weight] if has_weight else [])
    itemsize = max(jnp.dtype(t.dtype).itemsize for t in tensors)
    n_streams = len(tensors)
    block_rows = _choose_block_rows(rows, n_streams, width, itemsize)

    total_steps = _cdiv(rows, block_rows)
    if _tensorcores_per_chip() >= 2 and total_steps % 2 == 0:
        n_par, steps = 2, total_steps // 2   # each TC streams a contiguous half
    else:
        n_par, steps = 1, total_steps

    slabs = [_as_slab(t, rows, width, padded) for t in tensors]

    n_preds = len(preds)
    n_out = n_preds + (1 if has_weight else 0)
    in_spec = pl.BlockSpec((block_rows, width), lambda c, i: (c * steps + i, 0))
    out_spec = pl.BlockSpec((8, width), lambda c, i: (c, 0))

    kernel = _make_reduce_kernel(n_preds, has_weight, block_rows, width,
                                 rows, steps)
    outs = pl.pallas_call(
        kernel,
        out_shape=tuple(jax.ShapeDtypeStruct((n_par * 8, width), jnp.float32)
                        for _ in range(n_out)),
        grid_spec=pltpu.PrefetchScalarGridSpec(
            num_scalar_prefetch=0,
            grid=(n_par, steps),
            in_specs=[in_spec] * n_streams,
            out_specs=tuple(out_spec for _ in range(n_out)),
            scratch_shapes=[pltpu.VMEM((8, width), jnp.float32)
                            for _ in range(n_out)]),
        compiler_params=pltpu.CompilerParams(
            dimension_semantics=("parallel", "arbitrary"),
            vmem_limit_bytes=_VMEM_LIMIT),
    )(*slabs)
    if not isinstance(outs, (tuple, list)):
        outs = (outs,)
    sums = [jnp.sum(o) for o in outs[:n_preds]]
    wsum = jnp.sum(outs[n_preds]) if has_weight else None
    return sums, wsum


def _pallas_l1_none(pred, target):
    n = pred.size
    width, rows, padded = _pick_layout(n)
    out_dtype = jnp.result_type(pred.dtype, target.dtype)
    itemsize = max(jnp.dtype(pred.dtype).itemsize,
                   jnp.dtype(target.dtype).itemsize,
                   jnp.dtype(out_dtype).itemsize)
    block_rows = _choose_block_rows(rows, 3, width, itemsize)
    steps = _cdiv(rows, block_rows)

    p2 = _as_slab(pred, rows, width, padded)
    t2 = _as_slab(target, rows, width, padded)

    spec = pl.BlockSpec((block_rows, width), lambda i: (i, 0))
    out = pl.pallas_call(
        _l1_none_kernel,
        out_shape=jax.ShapeDtypeStruct((rows, width), out_dtype),
        grid_spec=pltpu.PrefetchScalarGridSpec(
            num_scalar_prefetch=0,
            grid=(steps,),
            in_specs=[spec, spec],
            out_specs=spec),
        compiler_params=pltpu.CompilerParams(
            dimension_semantics=("parallel",),
            vmem_limit_bytes=_VMEM_LIMIT),
    )(p2, t2)
    if padded:
        # Only for truly ragged sizes; common image shapes reshape for free.
        return out.reshape(-1)[:n].reshape(pred.shape)
    return out.reshape(pred.shape)


def _l1_reduced(preds, target, weight, reduction):
    """List of per-pred reduced losses (basicsr @weighted_loss semantics)."""
    if weight is not None and weight.shape != preds[0].shape:
        # TODO(synk): avoid materializing the channel-broadcast weight by
        # adding a channel grid axis whose weight index_map ignores it.
        weight = jnp.broadcast_to(weight, preds[0].shape)
    sums, wsum = _pallas_l1_reduce_sums(preds, target, weight)
    if reduction == 'sum':
        return sums
    # 'mean': denominator is sum(broadcast weight) (== sum(w) or sum(w)*C in
    # basicsr), or the element count when unweighted.
    denom = wsum if weight is not None else jnp.float32(preds[0].size)
    return [s / denom for s in sums]


def l1_loss(pred, target, weight=None, reduction='mean'):
    """Matches the @weighted_loss-decorated F.l1_loss (basicsr semantics)."""
    if reduction not in ('none', 'mean', 'sum'):
        raise ValueError(f'Unsupported reduction mode: {reduction}. '
                         f"Supported ones are: ['none', 'mean', 'sum']")
    if reduction == 'none':
        loss = _pallas_l1_none(pred, target)
        if weight is not None:
            loss = loss * weight  # elementwise (broadcasting) weight
        return loss
    return _l1_reduced([pred], target, weight, reduction)[0]


class L1Loss:
    """JAX/Pallas port of the PyTorch L1Loss module (no parameters)."""

    def __init__(self, loss_weight=1.0, reduction='mean'):
        if reduction not in ('none', 'mean', 'sum'):
            raise ValueError(
                f'Unsupported reduction mode: {reduction}. '
                f"Supported ones are: ['none', 'mean', 'sum']")
        self.loss_weight = loss_weight
        self.reduction = reduction

    def __call__(self, pred, target, weight=None, **kwargs):
        if isinstance(pred, (list, tuple)):
            preds = list(pred)
            if (self.reduction in ('mean', 'sum')
                    and all(p.shape == target.shape for p in preds)):
                # Fused: target (and weight) stream from HBM exactly once.
                losses = _l1_reduced(preds, target, weight, self.reduction)
                loss = losses[0]
                for extra in losses[1:]:
                    loss = loss + extra
            else:
                loss = 0.0
                for predi in preds:
                    loss = loss + l1_loss(predi, target, weight,
                                          reduction=self.reduction)
            return self.loss_weight * loss
        return self.loss_weight * l1_loss(pred, target, weight,
                                          reduction=self.reduction)


if __name__ == "__main__":
    key = jax.random.PRNGKey(0)
    k1, k2, k3, k4 = jax.random.split(key, 4)

    # --- small NCHW case, consistent with the module ---
    shape = (2, 4, 16, 16)
    pred = jax.random.normal(k1, shape, dtype=jnp.float32)
    target = jax.random.normal(k2, shape, dtype=jnp.float32)
    weight = jax.nn.sigmoid(jax.random.normal(k3, shape, dtype=jnp.float32))

    loss_fn = L1Loss(loss_weight=1.0, reduction='mean')

    # mean, no weight
    loss = jax.block_until_ready(loss_fn(pred, target))
    ref = jnp.mean(jnp.abs(pred - target))
    assert jnp.allclose(loss, ref, rtol=1e-5, atol=1e-6), (loss, ref)

    # sum
    loss_sum = jax.block_until_ready(L1Loss(reduction='sum')(pred, target))
    assert jnp.allclose(loss_sum, jnp.sum(jnp.abs(pred - target)),
                        rtol=1e-5, atol=1e-3)

    # none (elementwise)
    loss_none = jax.block_until_ready(L1Loss(reduction='none')(pred, target))
    assert loss_none.shape == shape
    assert jnp.allclose(loss_none, jnp.abs(pred - target),
                        rtol=1e-5, atol=1e-6)

    # weighted mean (full-shape weight): sum(|p-t|*w) / sum(w)
    loss_w = jax.block_until_ready(loss_fn(pred, target, weight=weight))
    ref_w = jnp.sum(jnp.abs(pred - target) * weight) / jnp.sum(weight)
    assert jnp.allclose(loss_w, ref_w, rtol=1e-5, atol=1e-5), (loss_w, ref_w)

    # weighted mean (single-channel weight, broadcast): denom = sum(w) * C
    w1 = weight[:, :1]
    loss_w1 = jax.block_until_ready(loss_fn(pred, target, weight=w1))
    ref_w1 = (jnp.sum(jnp.abs(pred - target) * w1)
              / (jnp.sum(w1) * shape[1]))
    assert jnp.allclose(loss_w1, ref_w1, rtol=1e-5, atol=1e-5)

    # list-of-preds path (fused kernel: one target/weight stream)
    loss_list = jax.block_until_ready(
        loss_fn([pred, 0.5 * pred], target, weight=weight))
    ref_list = (jnp.sum(jnp.abs(pred - target) * weight) / jnp.sum(weight)
                + jnp.sum(jnp.abs(0.5 * pred - target) * weight)
                / jnp.sum(weight))
    assert jnp.allclose(loss_list, ref_list, rtol=1e-5, atol=1e-5)

    # bf16 native-dtype path (kernel casts to f32, accumulates in f32)
    pred_bf = pred.astype(jnp.bfloat16)
    target_bf = target.astype(jnp.bfloat16)
    loss_bf = jax.block_until_ready(loss_fn(pred_bf, target_bf))
    ref_bf = jnp.mean(jnp.abs(pred_bf.astype(jnp.float32)
                              - target_bf.astype(jnp.float32)))
    assert jnp.allclose(loss_bf, ref_bf, rtol=1e-5, atol=1e-5)

    # medium case: multi-block grid, zero-copy slab, divisor-picked block rows
    shape_m = (2, 8, 256, 512)  # 2,097,152 elems
    pm = jax.random.normal(k4, shape_m, dtype=jnp.float32)
    tm_ = jax.random.normal(k1, shape_m, dtype=jnp.float32)
    loss_m = jax.block_until_ready(loss_fn(pm, tm_))
    assert jnp.allclose(loss_m, jnp.mean(jnp.abs(pm - tm_)),
                        rtol=1e-4, atol=1e-5)

    # ragged size -> padded fallback path
    shape_r = (2, 3, 17, 19)
    pr = jax.random.normal(k2, shape_r, dtype=jnp.float32)
    tr = jax.random.normal(k3, shape_r, dtype=jnp.float32)
    loss_r = jax.block_until_ready(L1Loss(reduction='sum')(pr, tr))
    assert jnp.allclose(loss_r, jnp.sum(jnp.abs(pr - tr)),
                        rtol=1e-5, atol=1e-4)

    print("KERNEL_OK")
</pallas_src>

<mosaic_0001>
module attributes {stable_mosaic.version = 11 : i64} {
  func.func @kernel(%arg0: i32, %arg1: i32, %arg2: memref<8x256xf32, #tpu.memory_space<vmem>>, %arg3: memref<8x256xf32, #tpu.memory_space<vmem>>, %arg4: memref<8x256xf32, #tpu.memory_space<vmem>>, %arg5: memref<8x256xf32, #tpu.memory_space<vmem>>) attributes {dimension_semantics = [#tpu.dimension_semantics<parallel>, #tpu.dimension_semantics<arbitrary>], iteration_bounds = array<i64: 1, 1>, scalar_prefetch = 0 : i64, scratch_operands = 1 : i64, tpu.core_type = #tpu.core_type<tc>, window_params = [{transform_indices = @transform_0, window_bounds = array<i64: 8, 256>}, {transform_indices = @transform_1, window_bounds = array<i64: 8, 256>}, {transform_indices = @transform_2, window_bounds = array<i64: 8, 256>}]} {
    %c0_i32 = arith.constant 0 : i32
    %0 = arith.cmpi eq, %arg1, %c0_i32 : i32
    %1 = arith.extui %0 : i1 to i32
    %c0_i32_0 = arith.constant 0 : i32
    %2 = arith.cmpi ne, %1, %c0_i32_0 : i32
    scf.if %2 {
      %cst_10 = arith.constant 0.000000e+00 : f32
      %15 = vector.broadcast %cst_10 : f32 to vector<8x256xf32>
      %c0_11 = arith.constant 0 : index
      %c0_12 = arith.constant 0 : index
      %16 = vector.load %arg5[%c0_11, %c0_12] : memref<8x256xf32, #tpu.memory_space<vmem>>, vector<8x256xf32>
      tpu.vector_store %arg5[%c0_11, %c0_12], %15 {strides = array<i32>} : memref<8x256xf32, #tpu.memory_space<vmem>>, vector<8x256xf32>,
    } else {
    }
    %c0 = arith.constant 0 : index
    %c0_1 = arith.constant 0 : index
    %3 = vector.load %arg3[%c0, %c0_1] : memref<8x256xf32, #tpu.memory_space<vmem>>, vector<8x256xf32>
    %c0_2 = arith.constant 0 : index
    %c0_3 = arith.constant 0 : index
    %4 = vector.load %arg2[%c0_2, %c0_3] : memref<8x256xf32, #tpu.memory_space<vmem>>, vector<8x256xf32>
    %5 = arith.subf %4, %3 : vector<8x256xf32>
    %6 = math.absf %5 : vector<8x256xf32>
    %c0_4 = arith.constant 0 : index
    %c0_5 = arith.constant 0 : index
    %7 = vector.load %arg5[%c0_4, %c0_5] : memref<8x256xf32, #tpu.memory_space<vmem>>, vector<8x256xf32>
    %8 = vector.shape_cast %6 : vector<8x256xf32> to vector<1x8x256xf32>
    %cst = arith.constant dense<0.000000e+00> : vector<8x256xf32>
    %9 = vector.multi_reduction <add>, %8, %cst [0] : vector<1x8x256xf32> to vector<8x256xf32>
    %10 = arith.addf %7, %9 : vector<8x256xf32>
    %c0_6 = arith.constant 0 : index
    %c0_7 = arith.constant 0 : index
    %11 = vector.load %arg5[%c0_6, %c0_7] : memref<8x256xf32, #tpu.memory_space<vmem>>, vector<8x256xf32>
    tpu.vector_store %arg5[%c0_6, %c0_7], %10 {strides = array<i32>} : memref<8x256xf32, #tpu.memory_space<vmem>>, vector<8x256xf32>,
    %c0_i32_8 = arith.constant 0 : i32
    %12 = arith.cmpi eq, %arg1, %c0_i32_8 : i32
    %13 = arith.extui %12 : i1 to i32
    %c0_i32_9 = arith.constant 0 : i32
    %14 = arith.cmpi ne, %13, %c0_i32_9 : i32
    scf.if %14 {
      %c0_10 = arith.constant 0 : index
      %c0_11 = arith.constant 0 : index
      %15 = vector.load %arg5[%c0_10, %c0_11] : memref<8x256xf32, #tpu.memory_space<vmem>>, vector<8x256xf32>
      %c0_12 = arith.constant 0 : index
      %c0_13 = arith.constant 0 : index
      %16 = vector.load %arg4[%c0_12, %c0_13] : memref<8x256xf32, #tpu.memory_space<vmem>>, vector<8x256xf32>
      tpu.vector_store %arg4[%c0_12, %c0_13], %15 {strides = array<i32>} : memref<8x256xf32, #tpu.memory_space<vmem>>, vector<8x256xf32>,
    } else {
    }
    return
  }
  func.func @transform_0(%arg0: i32, %arg1: i32) -> (i32, i32) {
    %c1_i32 = arith.constant 1 : i32
    %0 = arith.muli %arg0, %c1_i32 : i32
    %1 = arith.addi %0, %arg1 : i32
    %c0_i32 = arith.constant 0 : i32
    %c0_i32_0 = arith.constant 0 : i32
    return %1, %c0_i32 : i32, i32
  }
  func.func @transform_1(%arg0: i32, %arg1: i32) -> (i32, i32) {
    %c1_i32 = arith.constant 1 : i32
    %0 = arith.muli %arg0, %c1_i32 : i32
    %1 = arith.addi %0, %arg1 : i32
    %c0_i32 = arith.constant 0 : i32
    %c0_i32_0 = arith.constant 0 : i32
    return %1, %c0_i32 : i32, i32
  }
  func.func @transform_2(%arg0: i32, %arg1: i32) -> (i32, i32) {
    %c0_i32 = arith.constant 0 : i32
    %c0_i32_0 = arith.constant 0 : i32
    return %arg0, %c0_i32 : i32, i32
  }
}

</mosaic_0001>

<bundles_post_ra>
// kernel: tpu_custom_call.1
= control target key start
LH: loop header
LB: loop body
LE: loop exit
PB: predicated region body
PF: predicated region fallthrough
CT: control target
= control target key end

     0   :  { %7 = vsyncpa [#allocation4], 0  ;;  %s220_s0 = inlined_call_operand.hbm [shape: f32[8,256], index: 0, kind: input, shape index: {}]   ;;  %s221_s1 = inlined_call_operand.hbm [shape: f32[8,256], index: 1, kind: input, shape index: {}]   ;;  %s222_s2 = inlined_call_operand.hbm [shape: f32[8,256], index: 2, kind: output, shape index: {}]  }
   0x1   :  { %8 = vsyncpa [#allocation7], 0 }
   0x2   :  { %9 = vsyncpa [#allocation5], 0  ;;  %s166_s9 = smov [#allocation3]   ;;  %s167_s11 = smov [#allocation6]  }
   0x3   :  { %s20_s10 = sshll.u32 %s166_s9, 4  ;;  %s34_s12 = sshll.u32 %s167_s11, 4  ;;  %s21_s10 = int_to_ptr.vmem [resolvable:$true] %s20_s10  ;;  %s35_s12 = int_to_ptr.vmem [resolvable:$true] %s34_s12 }
   0x4   :  { %s94_s15 = scalar_lea.hbm %s220_s0, 256 }
   0x5   :  { %p95_p0 = scmp.ne.s32.totalorder %s220_s0, %s94_s15  ;;  %p98_p1 = scmp.lt.u32.totalorder %s94_s15, %s220_s0 }
   0x7   :  { %p100_p2 = pnand %p98_p1, %p95_p0 }
   0x9   :  { %103 = shalt.err (!%p100_p2)
}
   0xa   :  { %s104_s20 = scalar_lea.vmem %s21_s10, 256  ;;  %p109_p4 = scmp.lt.s32.totalorder %s21_s10, %s21_s10 }
   0xb   :  { %p105_p3 = scmp.ne.s32.totalorder %s21_s10, %s104_s20  ;;  %p110_p5 = scmp.lt.s32.totalorder %s104_s20, %s104_s20 }
   0xd   :  { %p111_p6 = por %p110_p5, %p109_p4 }
   0xf   :  { %p112_p7 = pnand %p111_p6, %p105_p3 }
  0x11   :  { %115 = shalt.err (!%p112_p7)
}
  0x12   :  { %23 = dma.hbm_to_vmem [thread:$0]  %s220_s0, 256, %s21_s10, [#allocation4]  }
  0x13   :  { %s116_s25 = scalar_lea.hbm %s221_s1, 256 }
  0x14   :  { %p117_p8 = scmp.ne.s32.totalorder %s221_s1, %s116_s25  ;;  %p120_p9 = scmp.lt.u32.totalorder %s116_s25, %s221_s1 }
  0x16   :  { %p122_p10 = pnand %p120_p9, %p117_p8 }
  0x18   :  { %125 = shalt.err (!%p122_p10)
}
  0x19   :  { %s126_s30 = scalar_lea.vmem %s35_s12, 256  ;;  %p131_p12 = scmp.lt.s32.totalorder %s35_s12, %s35_s12 }
  0x1a   :  { %p127_p11 = scmp.ne.s32.totalorder %s35_s12, %s126_s30  ;;  %p132_p13 = scmp.lt.s32.totalorder %s126_s30, %s126_s30 }
  0x1c   :  { %p133_p0 = por %p132_p13, %p131_p12 }
  0x1e   :  { %p134_p1 = pnand %p133_p0, %p127_p11 }
  0x20   :  { %137 = shalt.err (!%p134_p1)
}
  0x21   :  { %37 = dma.hbm_to_vmem [thread:$0]  %s221_s1, 256, %s35_s12, [#allocation7]  }
  0x22   :  { %160 = dma.done.wait [#allocation4], 256  }
  0x23   :  { %161 = vsyncadd [#allocation4], 4294967040 }
  0x24   :  { %162 = dma.done.wait [#allocation7], 256  }
  0x25   :  { %163 = vsyncadd [#allocation7], 4294967040  ;;  %v52_v0 = vld [vmem:[#allocation6] sm:$0xff]  ;;  %v54_v1 = vld [vmem:[#allocation3] sm:$0xff]  ;;  %s168_s4 = smov [#allocation8]  }
  0x26   :  { %v53_v2 = vld [vmem:[#allocation6 + $0x8] sm:$0xff]  ;;  %v56_v3 = vsub.f32 %v54_v1, %v52_v0  ;;  %v55_v4 = vld [vmem:[#allocation3 + $0x8] sm:$0xff]  ;;  %s81_s5 = sshll.u32 %s168_s4, 4  ;;  %s82_s5 = int_to_ptr.vmem [resolvable:$true] %s81_s5 }
  0x27   :  { %v57_v5 = vsub.f32 %v55_v4, %v53_v2  ;;  %s138_s6 = scalar_lea.vmem %s82_s5, 256  ;;  %p143_p3 = scmp.lt.s32.totalorder %s82_s5, %s82_s5 }
  0x28   :  { %v58_v6 = vand.u32 2147483647, %v56_v3  ;;  %p139_p2 = scmp.ne.s32.totalorder %s82_s5, %s138_s6  ;;  %p144_p4 = scmp.lt.s32.totalorder %s138_s6, %s138_s6 }
  0x29   :  { %v59_v7 = vand.u32 2147483647, %v57_v5 }
  0x2a   :  { %73 = vst [vmem:[#allocation8] sm:$0xff] %v58_v6  ;;  %p145_p5 = por %p144_p4, %p143_p3 }
  0x2b   :  { %74 = vst [vmem:[#allocation8 + $0x8] sm:$0xff] %v59_v7 }
  0x2c   :  { %p146_p6 = pnand %p145_p5, %p139_p2 }
  0x2e   :  { %149 = shalt.err (!%p146_p6)
}
  0x2f   :  { %s150_s8 = scalar_lea.hbm %s222_s2, 256 }
  0x30   :  { %p151_p7 = scmp.ne.s32.totalorder %s222_s2, %s150_s8  ;;  %p154_p8 = scmp.lt.u32.totalorder %s150_s8, %s222_s2 }
  0x32   :  { %p156_p9 = pnand %p154_p8, %p151_p7 }
  0x34   :  { %159 = shalt.err (!%p156_p9)
}
  0x35   :  { %84 = dma.vmem_to_hbm [thread:$0]  %s82_s5, 256, %s222_s2, [#allocation5]  }
  0x36   :  { %164 = dma.done.wait [#allocation5], 256  }
  0x37   :  { %165 = vsyncadd [#allocation5], 4294967040 }
  0x38   :  { %88 = vsyncpa [#allocation4], 1 }
  0x39   :  { %89 = vsyncpa [#allocation7], 1 }
  0x3a   :  { %90 = vsyncpa [#allocation5], 1 }

</bundles_post_ra>
